<compile_context>
chip_gen: v7x
topology: tpu7x:2x2x1
jax: 0.10.0
libtpu: 0.0.40
codegen_flags: <defaults>
</compile_context>

<pallas_src>
import math

import jax
import jax.numpy as jnp
from jax.experimental import pallas as pl
from jax.experimental.pallas import tpu as pltpu


def _round_up(x, m):
    return ((x + m - 1) // m) * m


def _cdiv(a, b):
    return -(-a // b)


def _ensemble_mean_kernel(xT_ref, w1_ref, b1_ref, w2_ref, b2_ref, w3_ref,
                          b3_ref, out_ref):
    # Ensemble already folded into the weights: one fused pass per batch tile.
    x = xT_ref[...]                                           # (in_dim, TM)
    # Layer 1: (E*h1, in_dim) @ (in_dim, TM) on the MXU; bias + tanh in f32.
    h = jnp.dot(w1_ref[...], x, preferred_element_type=jnp.float32)
    h = jnp.tanh(h + b1_ref[...])                             # (E*h1, TM) f32
    # Layer 2: block-diagonal (E*h2, E*h1) @ (E*h1, TM) on the MXU.
    h = jnp.dot(w2_ref[...], h.astype(w2_ref.dtype),
                preferred_element_type=jnp.float32)
    h = jnp.tanh(h + b2_ref[...])                             # (E*h2, TM) f32
    # Output head (output_dim == 1): VPU multiply + sublane (XLU) reduction.
    # w3 is pre-scaled by 1/E and b3 pre-averaged, so this IS the ensemble
    # mean; result is lane-dense (1, TM) — no masked store, no N=1 matmul.
    out_ref[...] = (jnp.sum(h * w3_ref[...], axis=0, keepdims=True)
                    + b3_ref[...])


def ensemble_mean_forward(x, params, *, block_batch=1024,
                          matmul_dtype=jnp.bfloat16):
    """EnsembleStd.forward: mean over members of 3-layer tanh MLPs, squeeze(-1).

    params (stacked over E, PyTorch nn.Linear layout):
      w1: (E, h1, in_dim), b1: (E, h1, 1)
      w2: (E, h2, h1),     b2: (E, h2, 1)
      w3: (E, 1,  h2),     b3: (E, 1, 1)     (output_dim must be 1)
    """
    w1, b1, w2, b2, w3, b3 = params
    num_net, h1, in_dim = w1.shape
    h2 = w2.shape[1]
    assert w3.shape == (num_net, 1, h2), "kernel is specialised to output_dim == 1"
    # TODO(synk): output_dim > 1 would need an (E*h2, output_dim)-per-member
    # MXU head + per-member column mean instead of the single reduced column.

    batch = x.shape[0]

    # --- Fold the ensemble into the weights (tiny one-off host work). -------
    w1f = w1.reshape(num_net * h1, in_dim)                      # (E*h1, in)
    b1f = b1.reshape(num_net * h1, 1).astype(jnp.float32)       # (E*h1, 1)
    eye = jnp.eye(num_net, dtype=w2.dtype)
    w2f = (eye[:, None, :, None] * w2[:, :, None, :]).reshape(  # block-diag
        num_net * h2, num_net * h1)                             # (E*h2, E*h1)
    b2f = b2.reshape(num_net * h2, 1).astype(jnp.float32)       # (E*h2, 1)
    # 1/E-scaled output column + averaged output bias -> reduction == mean.
    w3f = (jnp.swapaxes(w3, 1, 2) / num_net).reshape(
        num_net * h2, 1).astype(jnp.float32)                    # (E*h2, 1)
    b3f = jnp.mean(b3, axis=0).reshape(1, 1).astype(jnp.float32)

    w1c = w1f.astype(matmul_dtype)
    w2c = w2f.astype(matmul_dtype)

    # --- Lane-dense batch tiling. -------------------------------------------
    padded = _round_up(max(batch, 1), 128)
    if padded >= 256:
        # Guarantee >= 2 tiles so the "parallel" axis can shard across both
        # v7x TensorCores; cap the tile at block_batch.
        tm = min(block_batch, _round_up(_cdiv(padded, 2), 128))
    else:
        tm = padded
    tm = max(128, _round_up(tm, 128))
    num_tiles = _cdiv(padded, tm)   # last tile may be ragged (write is masked)

    # Cast BEFORE pad/transpose so the wrapper-side transpose moves bf16.
    xT = jnp.pad(x.astype(matmul_dtype), ((0, padded - batch), (0, 0))).T

    def resident(shape):
        # Full-array block, constant index -> loaded once, stays VMEM-resident.
        return pl.BlockSpec(shape, lambda i: (0,) * len(shape))

    out = pl.pallas_call(
        _ensemble_mean_kernel,
        out_shape=jax.ShapeDtypeStruct((1, padded), jnp.float32),
        grid=(num_tiles,),
        in_specs=[
            pl.BlockSpec((in_dim, tm), lambda i: (0, i)),   # streamed obs tile
            resident(w1c.shape), resident(b1f.shape),
            resident(w2c.shape), resident(b2f.shape),
            resident(w3f.shape), resident(b3f.shape),
        ],
        out_specs=pl.BlockSpec((1, tm), lambda i: (0, i)),
        compiler_params=pltpu.CompilerParams(
            dimension_semantics=("parallel",)),
    )(xT, w1c, b1f, w2c, b2f, w3f, b3f)

    return out[0, :batch]


def init_stacked_linear(key, num_net, fan_in, fan_out):
    """Deterministic init mimicking torch.nn.Linear default, stacked over E."""
    kw, kb = jax.random.split(key)
    bound = 1.0 / math.sqrt(fan_in)
    w = jax.random.uniform(kw, (num_net, fan_out, fan_in), jnp.float32,
                           -bound, bound)
    b = jax.random.uniform(kb, (num_net, fan_out, 1), jnp.float32,
                           -bound, bound)
    return w, b


if __name__ == "__main__":
    # Small shapes consistent with the module:
    # num_net=5 ensemble members, input_dim=16, hidden=(32, 32), output_dim=1.
    num_net, input_dim, h1, h2, output_dim = 5, 16, 32, 32, 1
    batch = 8

    key = jax.random.PRNGKey(0)
    k_x, k1, k2, k3 = jax.random.split(key, 4)

    x = jax.random.normal(k_x, (batch, input_dim), jnp.float32)

    w1, b1 = init_stacked_linear(k1, num_net, input_dim, h1)
    w2, b2 = init_stacked_linear(k2, num_net, h1, h2)
    w3, b3 = init_stacked_linear(k3, num_net, h2, output_dim)
    params = (w1, b1, w2, b2, w3, b3)

    # Pure-JAX reference of EnsembleStd.forward (mean over members, squeeze).
    ref_sum = jnp.zeros((batch, output_dim), jnp.float32)
    for e in range(num_net):
        h = jnp.tanh(x @ w1[e].T + b1[e, :, 0])
        h = jnp.tanh(h @ w2[e].T + b2[e, :, 0])
        ref_sum = ref_sum + (h @ w3[e].T + b3[e, :, 0])
    ref = jnp.squeeze(ref_sum / num_net, axis=-1)

    # Exact-path check (f32 MXU inputs).
    out_f32 = jax.block_until_ready(
        ensemble_mean_forward(x, params, matmul_dtype=jnp.float32))
    assert out_f32.shape == (batch,), out_f32.shape
    assert jnp.allclose(out_f32, ref, atol=1e-4, rtol=1e-4), "f32 mismatch vs reference"

    # Default fast path (bf16 MXU inputs, f32 bias/tanh/accumulation).
    out_bf16 = jax.block_until_ready(ensemble_mean_forward(x, params))
    assert out_bf16.shape == (batch,), out_bf16.shape
    assert jnp.allclose(out_bf16, ref, atol=5e-2, rtol=5e-2), "bf16 mismatch vs reference"

    print("KERNEL_OK")
</pallas_src>

<mosaic_0001>
module attributes {stable_mosaic.version = 11 : i64} {
  func.func @_ensemble_mean_kernel(%arg0: i32, %arg1: memref<16x128xf32, #tpu.memory_space<vmem>>, %arg2: memref<160x16xf32, #tpu.memory_space<vmem>>, %arg3: memref<160x1xf32, #tpu.memory_space<vmem>>, %arg4: memref<160x160xf32, #tpu.memory_space<vmem>>, %arg5: memref<160x1xf32, #tpu.memory_space<vmem>>, %arg6: memref<160x1xf32, #tpu.memory_space<vmem>>, %arg7: memref<1x1xf32, #tpu.memory_space<vmem>>, %arg8: memref<1x128xf32, #tpu.memory_space<vmem>>) attributes {dimension_semantics = [#tpu.dimension_semantics<parallel>], iteration_bounds = array<i64: 1>, scalar_prefetch = 0 : i64, scratch_operands = 0 : i64, tpu.core_type = #tpu.core_type<tc>, window_params = [{transform_indices = @transform_0, window_bounds = array<i64: 16, 128>}, {pipeline_mode = #tpu.pipeline_mode<synchronous>, transform_indices = @transform_1, window_bounds = array<i64: 160, 16>}, {pipeline_mode = #tpu.pipeline_mode<synchronous>, transform_indices = @transform_2, window_bounds = array<i64: 160, 1>}, {pipeline_mode = #tpu.pipeline_mode<synchronous>, transform_indices = @transform_3, window_bounds = array<i64: 160, 160>}, {pipeline_mode = #tpu.pipeline_mode<synchronous>, transform_indices = @transform_4, window_bounds = array<i64: 160, 1>}, {pipeline_mode = #tpu.pipeline_mode<synchronous>, transform_indices = @transform_5, window_bounds = array<i64: 160, 1>}, {pipeline_mode = #tpu.pipeline_mode<synchronous>, transform_indices = @transform_6, window_bounds = array<i64: 1, 1>}, {transform_indices = @transform_7, window_bounds = array<i64: 1, 128>}]} {
    %c0 = arith.constant 0 : index
    %c0_0 = arith.constant 0 : index
    %0 = vector.load %arg1[%c0, %c0_0] : memref<16x128xf32, #tpu.memory_space<vmem>>, vector<16x128xf32>
    %c0_1 = arith.constant 0 : index
    %c0_2 = arith.constant 0 : index
    %1 = vector.load %arg2[%c0_1, %c0_2] : memref<160x16xf32, #tpu.memory_space<vmem>>, vector<160x16xf32>
    %cst = arith.constant dense<0.000000e+00> : vector<160x128xf32>
    %2 = tpu.matmul %1, %0, %cst {dimension_numbers = #tpu.dot_dimension_numbers<[1], [0], [0], [1], [0, 0, 1, 1], [], []>} : vector<160x16xf32>, vector<16x128xf32>, vector<160x128xf32> -> vector<160x128xf32>
    %c0_3 = arith.constant 0 : index
    %c0_4 = arith.constant 0 : index
    %3 = vector.load %arg3[%c0_3, %c0_4] : memref<160x1xf32, #tpu.memory_space<vmem>>, vector<160x1xf32>
    %4 = vector.broadcast %3 : vector<160x1xf32> to vector<160x128xf32>
    %5 = arith.addf %2, %4 : vector<160x128xf32>
    %6 = math.tanh %5 : vector<160x128xf32>
    %c0_5 = arith.constant 0 : index
    %c0_6 = arith.constant 0 : index
    %7 = vector.load %arg4[%c0_5, %c0_6] : memref<160x160xf32, #tpu.memory_space<vmem>>, vector<160x160xf32>
    %cst_7 = arith.constant dense<0.000000e+00> : vector<160x128xf32>
    %8 = tpu.matmul %7, %6, %cst_7 {dimension_numbers = #tpu.dot_dimension_numbers<[1], [0], [0], [1], [0, 0, 1, 1], [], []>} : vector<160x160xf32>, vector<160x128xf32>, vector<160x128xf32> -> vector<160x128xf32>
    %c0_8 = arith.constant 0 : index
    %c0_9 = arith.constant 0 : index
    %9 = vector.load %arg5[%c0_8, %c0_9] : memref<160x1xf32, #tpu.memory_space<vmem>>, vector<160x1xf32>
    %10 = vector.broadcast %9 : vector<160x1xf32> to vector<160x128xf32>
    %11 = arith.addf %8, %10 : vector<160x128xf32>
    %12 = math.tanh %11 : vector<160x128xf32>
    %c0_10 = arith.constant 0 : index
    %c0_11 = arith.constant 0 : index
    %13 = vector.load %arg6[%c0_10, %c0_11] : memref<160x1xf32, #tpu.memory_space<vmem>>, vector<160x1xf32>
    %14 = vector.broadcast %13 : vector<160x1xf32> to vector<160x128xf32>
    %15 = arith.mulf %12, %14 : vector<160x128xf32>
    %cst_12 = arith.constant dense<0.000000e+00> : vector<128xf32>
    %16 = vector.multi_reduction <add>, %15, %cst_12 [0] : vector<160x128xf32> to vector<128xf32>
    %17 = vector.shape_cast %16 : vector<128xf32> to vector<1x128xf32>
    %c0_13 = arith.constant 0 : index
    %c0_14 = arith.constant 0 : index
    %18 = vector.load %arg7[%c0_13, %c0_14] : memref<1x1xf32, #tpu.memory_space<vmem>>, vector<1x1xf32>
    %19 = vector.broadcast %18 : vector<1x1xf32> to vector<1x128xf32>
    %20 = arith.addf %17, %19 : vector<1x128xf32>
    %c0_15 = arith.constant 0 : index
    %c0_16 = arith.constant 0 : index
    %21 = vector.load %arg8[%c0_15, %c0_16] : memref<1x128xf32, #tpu.memory_space<vmem>>, vector<1x128xf32>
    tpu.vector_store %arg8[%c0_15, %c0_16], %20 {strides = array<i32>} : memref<1x128xf32, #tpu.memory_space<vmem>>, vector<1x128xf32>,
    return
  }
  func.func @transform_0(%arg0: i32) -> (i32, i32) {
    %c0_i32 = arith.constant 0 : i32
    %c0_i32_0 = arith.constant 0 : i32
    return %c0_i32, %arg0 : i32, i32
  }
  func.func @transform_1(%arg0: i32) -> (i32, i32) {
    %c0_i32 = arith.constant 0 : i32
    %c0_i32_0 = arith.constant 0 : i32
    %c0_i32_1 = arith.constant 0 : i32
    return %c0_i32, %c0_i32_0 : i32, i32
  }
  func.func @transform_2(%arg0: i32) -> (i32, i32) {
    %c0_i32 = arith.constant 0 : i32
    %c0_i32_0 = arith.constant 0 : i32
    %c0_i32_1 = arith.constant 0 : i32
    return %c0_i32, %c0_i32_0 : i32, i32
  }
  func.func @transform_3(%arg0: i32) -> (i32, i32) {
    %c0_i32 = arith.constant 0 : i32
    %c0_i32_0 = arith.constant 0 : i32
    %c0_i32_1 = arith.constant 0 : i32
    return %c0_i32, %c0_i32_0 : i32, i32
  }
  func.func @transform_4(%arg0: i32) -> (i32, i32) {
    %c0_i32 = arith.constant 0 : i32
    %c0_i32_0 = arith.constant 0 : i32
    %c0_i32_1 = arith.constant 0 : i32
    return %c0_i32, %c0_i32_0 : i32, i32
  }
  func.func @transform_5(%arg0: i32) -> (i32, i32) {
    %c0_i32 = arith.constant 0 : i32
    %c0_i32_0 = arith.constant 0 : i32
    %c0_i32_1 = arith.constant 0 : i32
    return %c0_i32, %c0_i32_0 : i32, i32
  }
  func.func @transform_6(%arg0: i32) -> (i32, i32) {
    %c0_i32 = arith.constant 0 : i32
    %c0_i32_0 = arith.constant 0 : i32
    %c0_i32_1 = arith.constant 0 : i32
    return %c0_i32, %c0_i32_0 : i32, i32
  }
  func.func @transform_7(%arg0: i32) -> (i32, i32) {
    %c0_i32 = arith.constant 0 : i32
    %c0_i32_0 = arith.constant 0 : i32
    return %c0_i32, %arg0 : i32, i32
  }
}

</mosaic_0001>

<bundles_post_ra>
// kernel: tpu_custom_call.1
= control target key start
LH: loop header
LB: loop body
LE: loop exit
PB: predicated region body
PF: predicated region fallthrough
CT: control target
= control target key end

     0   :  { %s1817_s0 = inlined_call_operand.vmem [shape: f32[16,128], index: 0, kind: input, shape index: {}]   ;;  %s1818_s1 = inlined_call_operand.vmem [shape: f32[160,16], index: 1, kind: input, shape index: {}]   ;;  %s1819_s2 = inlined_call_operand.vmem [shape: f32[160,1], index: 2, kind: input, shape index: {}]   ;;  %s1820_s3 = inlined_call_operand.vmem [shape: f32[160,160], index: 3, kind: input, shape index: {}]   ;;  %s1821_s4 = inlined_call_operand.vmem [shape: f32[160,1], index: 4, kind: input, shape index: {}]   ;;  %s1822_s5 = inlined_call_operand.vmem [shape: f32[160,1], index: 5, kind: input, shape index: {}]   ;;  %s1823_s6 = inlined_call_operand.<no memory space> [shape: f32[1,1], index: 6, kind: input, shape index: {}]   ;;  %s1824_s7 = inlined_call_operand.hbm [shape: f32[1,128], index: 7, kind: output, shape index: {}]  }
   0x1   :  { %v12_v0 = vstv %s1823_s6 }
   0x2   :  { %13 = vst [vmem:[#allocation2] sm:$0x1] %v12_v0 }
   0x3   :  { %v53_v1 = vld [vmem:[%s1819_s2 + $0x10] sm:$0xff]  ;;  %v51_v2 = vld [vmem:[%s1819_s2] sm:$0xff]  ;;  %vm171_vm0 = vcmask 130048   ;;  %v1273_v4 = vmov 0   ;;  %v30_v5 = vld [vmem:[%s1817_s0 + $0x8] sm:$0xff] }
   0x4   :  { %v29_v3 = vld [vmem:[%s1817_s0] sm:$0xff]  ;;  %1168 = vset.pattern.permute.xlu1 %v1273_v4  ;;  %1167 = vset.pattern.permute.xlu0 %v1273_v4  ;;  %v54_v8 = vld [vmem:[%s1819_s2 + $0x18] sm:$0xff]  ;;  %v52_v9 = vld [vmem:[%s1819_s2 + $0x8] sm:$0xff] }
   0x5   :  { %83 = vperm.xlu1 %1168, %v53_v1   ;;  %73 = vperm.xlu0 %1167, %v51_v2   ;;  %v1110_v6 = vpack.c.bf16 %v30_v5, %v29_v3  ;;  %v31_v7 = vld [vmem:[%s1818_s1] sm:$0xff]  ;;  %v32_v10 = vld [vmem:[%s1818_s1 + $0x8] sm:$0xff]  ;;  %v33_v11 = vld [vmem:[%s1818_s1 + $0x10] sm:$0xff] }
   0x6   :  { %1080 = vmatprep.mubr.msk.f32.mxu0 %vm171_vm0, %v31_v7  ;;  %v56_v12 = vld [vmem:[%s1819_s2 + $0x28] sm:$0xff]  ;;  %v55_v13 = vld [vmem:[%s1819_s2 + $0x20] sm:$0xff]  ;;  %v34_v14 = vld [vmem:[%s1818_s1 + $0x18] sm:$0xff] }
   0x7   :  { %1111 = vmatprep.subr.bf16.mxu0 %v1110_v6  ;;  %v35_v15 = vld [vmem:[%s1818_s1 + $0x20] sm:$0xff]  ;;  %v58_v16 = vld [vmem:[%s1819_s2 + $0x38] sm:$0xff]  ;;  %v57_v17 = vld [vmem:[%s1819_s2 + $0x30] sm:$0xff] }
   0x8   :  { %1113 = vmatpush3.bf16.msra.mxu0 %v1110_v6  ;;  %v36_v18 = vld [vmem:[%s1818_s1 + $0x28] sm:$0xff]  ;;  %v37_v19 = vld [vmem:[%s1818_s1 + $0x30] sm:$0xff]  ;;  %v59_v21 = vld [vmem:[%s1819_s2 + $0x40] sm:$0xff] }
   0x9   :  { %88 = vperm.xlu1 %1168, %v54_v8   ;;  %78 = vperm.xlu0 %1167, %v52_v9   ;;  %v60_v20 = vld [vmem:[%s1819_s2 + $0x48] sm:$0xff]  ;;  %v38_v22 = vld [vmem:[%s1818_s1 + $0x38] sm:$0xff]  ;;  %v39_v23 = vld [vmem:[%s1818_s1 + $0x40] sm:$0xff] }
   0xa   :  { %v62_v24 = vld [vmem:[%s1819_s2 + $0x58] sm:$0xff]  ;;  %v61_v25 = vld [vmem:[%s1819_s2 + $0x50] sm:$0xff]  ;;  %v40_v26 = vld [vmem:[%s1818_s1 + $0x48] sm:$0xff] }
   0xb   :  { %1081 = vmatmul.mubr.msk.f32.vlgmr.msra.gmra.mrb[0].mxu0 %vm171_vm0, %v32_v10  ;;  %v41_v27 = vld [vmem:[%s1818_s1 + $0x50] sm:$0xff]  ;;  %v64_v28 = vld [vmem:[%s1819_s2 + $0x68] sm:$0xff]  ;;  %v63_v29 = vld [vmem:[%s1819_s2 + $0x60] sm:$0xff] }
   0xc   :  { %1083 = vmatprep.mubr.msk.f32.mxu0 %vm171_vm0, %v33_v11  ;;  %v42_v30 = vld [vmem:[%s1818_s1 + $0x58] sm:$0xff]  ;;  %v43_v31 = vld [vmem:[%s1818_s1 + $0x60] sm:$0xff]  ;;  %v65_v33 = vld [vmem:[%s1819_s2 + $0x70] sm:$0xff] }
   0xd   :  { %98 = vperm.xlu1 %1168, %v56_v12   ;;  %93 = vperm.xlu0 %1167, %v55_v13   ;;  %v66_v32 = vld [vmem:[%s1819_s2 + $0x78] sm:$0xff] }
   0xf   :  { %1084 = vmatmul.mubr.msk.f32.gmra.mrb[2].mxu0 %vm171_vm0, %v34_v14 }
  0x10   :  { %1086 = vmatprep.mubr.msk.f32.mxu0 %vm171_vm0, %v35_v15 }
  0x11   :  { %108 = vperm.xlu1 %1168, %v58_v16   ;;  %103 = vperm.xlu0 %1167, %v57_v17  }
  0x13   :  { %1087 = vmatmul.mubr.msk.f32.gmra.mrb[4].mxu0 %vm171_vm0, %v36_v18 }
  0x14   :  { %1089 = vmatprep.mubr.msk.f32.mxu0 %vm171_vm0, %v37_v19 }
  0x15   :  { %118 = vperm.xlu1 %1168, %v60_v20   ;;  %113 = vperm.xlu0 %1167, %v59_v21  }
  0x17   :  { %1090 = vmatmul.mubr.msk.f32.gmra.mrb[6].mxu0 %vm171_vm0, %v38_v22 }
  0x18   :  { %1092 = vmatprep.mubr.msk.f32.mxu0 %vm171_vm0, %v39_v23 }
  0x19   :  { %128 = vperm.xlu1 %1168, %v62_v24   ;;  %123 = vperm.xlu0 %1167, %v61_v25  }
  0x1b   :  { %1093 = vmatmul.mubr.msk.f32.gmra.mrb[8].mxu0 %vm171_vm0, %v40_v26 }
  0x1c   :  { %1095 = vmatprep.mubr.msk.f32.mxu0 %vm171_vm0, %v41_v27 }
  0x1d   :  { %138 = vperm.xlu1 %1168, %v64_v28   ;;  %133 = vperm.xlu0 %1167, %v63_v29  }
  0x1e   :  { %14 = vsyncpa [#allocation4], 0  ;;  %v44_v34 = vld [vmem:[%s1818_s1 + $0x68] sm:$0xff]  ;;  %v45_v35 = vld [vmem:[%s1818_s1 + $0x70] sm:$0xff]  ;;  %v1274_v17 = vmov 0.0|0.0   ;;  %vm577_vm1 = vcmask 261120  }
  0x1f   :  { %1096 = vmatmul.mubr.msk.f32.gmra.mrb[10].mxu0 %vm171_vm0, %v42_v30  ;;  %v68_v36 = vld [vmem:[%s1819_s2 + $0x88] sm:$0xff]  ;;  %v67_v37 = vld [vmem:[%s1819_s2 + $0x80] sm:$0xff]  ;;  %v46_v38 = vld [vmem:[%s1818_s1 + $0x78] sm:$0xff]  ;;  %1114 = vmatprep.subr.bf16.mxu0 %v1274_v17 }
  0x20   :  { %1098 = vmatprep.mubr.msk.f32.mxu0 %vm171_vm0, %v43_v31  ;;  %v47_v39 = vld [vmem:[%s1818_s1 + $0x80] sm:$0xff]  ;;  %v70_v40 = vld [vmem:[%s1819_s2 + $0x98] sm:$0xff]  ;;  %v69_v41 = vld [vmem:[%s1819_s2 + $0x90] sm:$0xff]  ;;  %1144 = vmatprep.subr.bf16.mxu1 %v1274_v17 }
  0x21   :  { %148 = vperm.xlu1 %1168, %v66_v32   ;;  %143 = vperm.xlu0 %1167, %v65_v33   ;;  %v48_v42 = vld [vmem:[%s1818_s1 + $0x88] sm:$0xff]  ;;  %v49_v43 = vld [vmem:[%s1818_s1 + $0x90] sm:$0xff]  ;;  %v457_v45 = vld [vmem:[%s1821_s4] sm:$0xff] }
  0x22   :  { %v458_v44 = vld [vmem:[%s1821_s4 + $0x8] sm:$0xff]  ;;  %v50_v46 = vld [vmem:[%s1818_s1 + $0x98] sm:$0xff]  ;;  %v459_v48 = vld [vmem:[%s1821_s4 + $0x10] sm:$0xff] }
  0x23   :  { %1099 = vmatmul.mubr.msk.f32.gmra.mrb[12].mxu0 %vm171_vm0, %v44_v34  ;;  %v460_v47 = vld [vmem:[%s1821_s4 + $0x18] sm:$0xff]  ;;  %v462_v49 = vld [vmem:[%s1821_s4 + $0x28] sm:$0xff]  ;;  %v461_v50 = vld [vmem:[%s1821_s4 + $0x20] sm:$0xff] }
  0x24   :  { %1101 = vmatprep.mubr.msk.f32.mxu0 %vm171_vm0, %v45_v35  ;;  %v464_v51 = vld [vmem:[%s1821_s4 + $0x38] sm:$0xff]  ;;  %v463_v52 = vld [vmem:[%s1821_s4 + $0x30] sm:$0xff]  ;;  %v466_v53 = vld [vmem:[%s1821_s4 + $0x48] sm:$0xff] }
  0x25   :  { %158 = vperm.xlu1 %1168, %v68_v36   ;;  %153 = vperm.xlu0 %1167, %v67_v37   ;;  %v465_v54 = vld [vmem:[%s1821_s4 + $0x40] sm:$0xff]  ;;  %v467_v56 = vld [vmem:[%s1821_s4 + $0x50] sm:$0xff]  ;;  %v824_v58 = vld [vmem:[%s1822_s5 + $0x8] sm:$0xff] }
  0x26   :  { %v823_v55 = vld [vmem:[%s1822_s5] sm:$0xff]  ;;  %v825_v57 = vld [vmem:[%s1822_s5 + $0x10] sm:$0xff]  ;;  %v826_v60 = vld [vmem:[%s1822_s5 + $0x18] sm:$0xff] }
  0x27   :  { %1102 = vmatmul.mubr.msk.f32.gmra.mrb[14].mxu0 %vm171_vm0, %v46_v38  ;;  %v827_v59 = vld [vmem:[%s1822_s5 + $0x20] sm:$0xff]  ;;  %v828_v61 = vld [vmem:[%s1822_s5 + $0x28] sm:$0xff]  ;;  %v468_v62 = vld [vmem:[%s1821_s4 + $0x58] sm:$0xff] }
  0x28   :  { %1104 = vmatprep.mubr.msk.f32.mxu0 %vm171_vm0, %v47_v39  ;;  %v829_v63 = vld [vmem:[%s1822_s5 + $0x30] sm:$0xff]  ;;  %v469_v0 = vld [vmem:[%s1821_s4 + $0x60] sm:$0xff]  ;;  %v830_v1 = vld [vmem:[%s1822_s5 + $0x38] sm:$0xff] }
  0x29   :  { %168 = vperm.xlu1 %1168, %v70_v40   ;;  %163 = vperm.xlu0 %1167, %v69_v41   ;;  %v470_v2 = vld [vmem:[%s1821_s4 + $0x68] sm:$0xff]  ;;  %v831_v3 = vld [vmem:[%s1822_s5 + $0x40] sm:$0xff]  ;;  %v471_v4 = vld [vmem:[%s1821_s4 + $0x70] sm:$0xff] }
  0x2a   :  { %v832_v5 = vld [vmem:[%s1822_s5 + $0x48] sm:$0xff]  ;;  %v472_v6 = vld [vmem:[%s1821_s4 + $0x78] sm:$0xff]  ;;  %v833_v7 = vld [vmem:[%s1822_s5 + $0x50] sm:$0xff] }
  0x2b   :  { %1105 = vmatmul.mubr.msk.f32.gmra.mrb[16].mxu0 %vm171_vm0, %v48_v42  ;;  %v473_v8 = vld [vmem:[%s1821_s4 + $0x80] sm:$0xff]  ;;  %v834_v9 = vld [vmem:[%s1822_s5 + $0x58] sm:$0xff]  ;;  %v474_v10 = vld [vmem:[%s1821_s4 + $0x88] sm:$0xff] }
  0x2c   :  { %1107 = vmatprep.mubr.msk.f32.mxu0 %vm171_vm0, %v49_v43  ;;  %v835_v11 = vld [vmem:[%s1822_s5 + $0x60] sm:$0xff]  ;;  %v475_v12 = vld [vmem:[%s1821_s4 + $0x90] sm:$0xff]  ;;  %v836_v13 = vld [vmem:[%s1822_s5 + $0x68] sm:$0xff] }
  0x2d   :  { %484 = vperm.xlu1 %1168, %v458_v44   ;;  %479 = vperm.xlu0 %1167, %v457_v45   ;;  %v476_v14 = vld [vmem:[%s1821_s4 + $0x98] sm:$0xff]  ;;  %v837_v16 = vld [vmem:[%s1822_s5 + $0x70] sm:$0xff]  ;;  %v840_v18 = vld [vmem:[%s1822_s5 + $0x88] sm:$0xff] }
  0x2e   :  { %v838_v15 = vld [vmem:[%s1822_s5 + $0x78] sm:$0xff]  ;;  %v839_v19 = vld [vmem:[%s1822_s5 + $0x80] sm:$0xff]  ;;  %v841_v21 = vld [vmem:[%s1822_s5 + $0x90] sm:$0xff] }
  0x2f   :  { %1108 = vmatmul.mubr.msk.f32.gmra.mrb[18].mxu0 %vm171_vm0, %v50_v46  ;;  %v842_v20 = vld [vmem:[%s1822_s5 + $0x98] sm:$0xff]  ;;  %v988_v22 = vld [vmem:[#allocation2] sm:$0x1]  ;;  %v418_v23 = vld [vmem:[%s1820_s3 + $0x8] sm:$0xff] }
  0x30   :  { %v436_v24 = vld [vmem:[%s1820_s3 + $0x98] sm:$0xff]  ;;  %1034 = vmatprep.mubr.msk.f32.mxu0 %vm577_vm1, %v418_v23 }
  0x31   :  { %494 = vperm.xlu1 %1168, %v460_v47   ;;  %489 = vperm.xlu0 %1167, %v459_v48  }
  0x32   :  { %1043 = vmatprep.mubr.msk.f32.mxu1 %vm577_vm1, %v436_v24 }
  0x35   :  { %504 = vperm.xlu1 %1168, %v462_v49   ;;  %499 = vperm.xlu0 %1167, %v461_v50  }
  0x39   :  { %514 = vperm.xlu1 %1168, %v464_v51   ;;  %509 = vperm.xlu0 %1167, %v463_v52  }
  0x3d   :  { %524 = vperm.xlu1 %1168, %v466_v53   ;;  %519 = vperm.xlu0 %1167, %v465_v54  }
  0x41   :  { %845 = vperm.xlu1 %1168, %v823_v55   ;;  %529 = vperm.xlu0 %1167, %v467_v56  }
  0x45   :  { %855 = vperm.xlu1 %1168, %v825_v57   ;;  %850 = vperm.xlu0 %1167, %v824_v58  }
  0x49   :  { %865 = vperm.xlu1 %1168, %v827_v59   ;;  %860 = vperm.xlu0 %1167, %v826_v60  }
  0x4d   :  { %870 = vperm.xlu1 %1168, %v828_v61   ;;  %534 = vperm.xlu0 %1167, %v468_v62  }
  0x51   :  { %875 = vperm.xlu1 %1168, %v829_v63   ;;  %539 = vperm.xlu0 %1167, %v469_v0  }
  0x55   :  { %880 = vperm.xlu1 %1168, %v830_v1   ;;  %544 = vperm.xlu0 %1167, %v470_v2  }
  0x59   :  { %885 = vperm.xlu1 %1168, %v831_v3   ;;  %549 = vperm.xlu0 %1167, %v471_v4  }
  0x5d   :  { %890 = vperm.xlu1 %1168, %v832_v5   ;;  %554 = vperm.xlu0 %1167, %v472_v6  }
  0x61   :  { %895 = vperm.xlu1 %1168, %v833_v7   ;;  %559 = vperm.xlu0 %1167, %v473_v8  }
  0x65   :  { %900 = vperm.xlu1 %1168, %v834_v9   ;;  %564 = vperm.xlu0 %1167, %v474_v10  }
  0x69   :  { %905 = vperm.xlu1 %1168, %v835_v11   ;;  %569 = vperm.xlu0 %1167, %v475_v12  }
  0x6d   :  { %910 = vperm.xlu1 %1168, %v836_v13   ;;  %574 = vperm.xlu0 %1167, %v476_v14  }
  0x71   :  { %920 = vperm.xlu1 %1168, %v838_v15   ;;  %915 = vperm.xlu0 %1167, %v837_v16  }
  0x75   :  { %930 = vperm.xlu1 %1168, %v840_v18   ;;  %925 = vperm.xlu0 %1167, %v839_v19  }
  0x79   :  { %940 = vperm.xlu1 %1168, %v842_v20   ;;  %935 = vperm.xlu0 %1167, %v841_v21  }
  0x7d   :  { %991 = vperm.xlu0 %1167, %v988_v22  }
  0x84   :  { %v84_v25 = vpop.permute.xlu1 %83  ;;  %v74_v26 = vpop.permute.xlu0 %73 }
  0x88   :  { %v89_v27 = vpop.permute.xlu1 %88  ;;  %v79_v28 = vpop.permute.xlu0 %78 }
  0x8c   :  { %v99_v29 = vpop.permute.xlu1 %98  ;;  %v94_v30 = vpop.permute.xlu0 %93 }
  0x90   :  { %v109_v31 = vpop.permute.xlu1 %108  ;;  %v104_v33 = vpop.permute.xlu0 %103 }
  0x94   :  { %v119_v40 = vpop.permute.xlu1 %118  ;;  %v114_v42 = vpop.permute.xlu0 %113 }
  0x98   :  { %v129_v47 = vpop.permute.xlu1 %128  ;;  %v124_v50 = vpop.permute.xlu0 %123 }
  0x9c   :  { %v139_v61 = vpop.permute.xlu1 %138  ;;  %v134_v63 = vpop.permute.xlu0 %133 }
  0xa0   :  { %v149_v8 = vpop.permute.xlu1 %148  ;;  %v144_v11 = vpop.permute.xlu0 %143 }
  0xa4   :  { %v159_v23 = vpop.permute.xlu1 %158 }
  0xde   :  { %v1082_v32 = vpop.f32.mrb[0].mxu0 }
  0xdf   :  { %v304_v34 = vadd.f32 %v1082_v32, %v79_v28  ;;  %v298_v35 = vpop.f32.mrb[1].mxu0 }
  0xe0   :  { %v299_v36 = vadd.f32 %v298_v35, %v74_v26 }
  0xe1   :  { %1169 = vtanh.f32 %v304_v34  ;;  %v169_v34 = vpop.permute.xlu1 %168 }
  0xe2   :  { %1171 = vtanh.f32 %v299_v36  ;;  %v1085_v37 = vpop.f32.mrb[2].mxu0 }
  0xe3   :  { %v314_v38 = vadd.f32 %v1085_v37, %v89_v27  ;;  %v308_v39 = vpop.f32.mrb[3].mxu0 }
  0xe4   :  { %v309_v41 = vadd.f32 %v308_v39, %v84_v25  ;;  %v154_v25 = vpop.permute.xlu0 %153 }
  0xe5   :  { %1173 = vtanh.f32 %v314_v38 }
  0xe6   :  { %1175 = vtanh.f32 %v309_v41  ;;  %v1088_v43 = vpop.f32.mrb[4].mxu0 }
  0xe7   :  { %v324_v44 = vadd.f32 %v1088_v43, %v99_v29  ;;  %v318_v45 = vpop.f32.mrb[5].mxu0 }
  0xe8   :  { %v319_v46 = vadd.f32 %v318_v45, %v94_v30  ;;  %v164_v37 = vpop.permute.xlu0 %163 }
  0xe9   :  { %1177 = vtanh.f32 %v324_v44 }
  0xea   :  { %1179 = vtanh.f32 %v319_v46  ;;  %v1091_v48 = vpop.f32.mrb[6].mxu0 }
  0xeb   :  { %v1170_v49 = vpop.eup %1169  ;;  %v334_v51 = vadd.f32 %v1091_v48, %v109_v31  ;;  %v328_v52 = vpop.f32.mrb[7].mxu0 }
  0xec   :  { %v1172_v53 = vpop.eup %1171  ;;  %v329_v54 = vadd.f32 %v328_v52, %v104_v33  ;;  %v417_v52 = vld [vmem:[%s1820_s3] sm:$0xff] }
  0xed   :  { %1181 = vtanh.f32 %v334_v51  ;;  %v1115_v55 = vpack.c.bf16 %v1170_v49, %v1172_v53  ;;  %v435_v53 = vld [vmem:[%s1820_s3 + $0x90] sm:$0xff] }
  0xee   :  { %1183 = vtanh.f32 %v329_v54  ;;  %v1094_v56 = vpop.f32.mrb[8].mxu0  ;;  %v420_v54 = vld [vmem:[%s1820_s3 + $0x18] sm:$0xff] }
  0xef   :  { %v1174_v57 = vpop.eup %1173  ;;  %v344_v58 = vadd.f32 %v1094_v56, %v119_v40  ;;  %v338_v59 = vpop.f32.mrb[9].mxu0  ;;  %1116 = vmatpush1.bf16.msra.mxu0 %v1115_v55  ;;  %1154 = vmatpush1.bf16.msra.mxu1 %v1115_v55  ;;  %v438_v55 = vld [vmem:[%s1820_s3 + $0xa8] sm:$0xff]  ;;  %v437_v56 = vld [vmem:[%s1820_s3 + $0xa0] sm:$0xff] }
  0xf0   :  { %v1176_v60 = vpop.eup %1175  ;;  %v339_v62 = vadd.f32 %v338_v59, %v114_v42  ;;  %1117 = vmatprep.subr.bf16.mxu0 %v1274_v17  ;;  %1145 = vmatprep.subr.bf16.mxu1 %v1274_v17  ;;  %v421_v59 = vld [vmem:[%s1820_s3 + $0x20] sm:$0xff] }
  0xf1   :  { %1185 = vtanh.f32 %v344_v58  ;;  %v1118_v0 = vpack.c.bf16 %v1174_v57, %v1176_v60  ;;  %v422_v57 = vld [vmem:[%s1820_s3 + $0x28] sm:$0xff]  ;;  %v440_v58 = vld [vmem:[%s1820_s3 + $0xb8] sm:$0xff]  ;;  %v439_v60 = vld [vmem:[%s1820_s3 + $0xb0] sm:$0xff] }
  0xf2   :  { %1187 = vtanh.f32 %v339_v62  ;;  %v1097_v1 = vpop.f32.mrb[10].mxu0  ;;  %v442_v62 = vld [vmem:[%s1820_s3 + $0xc8] sm:$0xff] }
  0xf3   :  { %v1178_v2 = vpop.eup %1177  ;;  %v354_v3 = vadd.f32 %v1097_v1, %v129_v47  ;;  %v348_v4 = vpop.f32.mrb[11].mxu0  ;;  %1119 = vmatpush1.bf16.msra.mxu0 %v1118_v0  ;;  %1155 = vmatpush1.bf16.msra.mxu1 %v1118_v0  ;;  %v441_v0 = vld [vmem:[%s1820_s3 + $0xc0] sm:$0xff]  ;;  %v426_v1 = vld [vmem:[%s1820_s3 + $0x48] sm:$0xff] }
  0xf4   :  { %v1180_v5 = vpop.eup %1179  ;;  %v349_v6 = vadd.f32 %v348_v4, %v124_v50  ;;  %1120 = vmatprep.subr.bf16.mxu0 %v1274_v17  ;;  %1146 = vmatprep.subr.bf16.mxu1 %v1274_v17  ;;  %v443_v4 = vld [vmem:[%s1820_s3 + $0xd0] sm:$0xff] }
  0xf5   :  { %1189 = vtanh.f32 %v354_v3  ;;  %v1121_v7 = vpack.c.bf16 %v1178_v2, %v1180_v5  ;;  %v444_v2 = vld [vmem:[%s1820_s3 + $0xd8] sm:$0xff]  ;;  %v425_v3 = vld [vmem:[%s1820_s3 + $0x40] sm:$0xff] }
  0xf6   :  { %1191 = vtanh.f32 %v349_v6  ;;  %v1100_v9 = vpop.f32.mrb[12].mxu0  ;;  %v428_v5 = vld [vmem:[%s1820_s3 + $0x58] sm:$0xff]  ;;  %v446_v6 = vld [vmem:[%s1820_s3 + $0xe8] sm:$0xff] }
  0xf7   :  { %v1182_v10 = vpop.eup %1181  ;;  %v364_v12 = vadd.f32 %v1100_v9, %v139_v61  ;;  %v358_v13 = vpop.f32.mrb[13].mxu0  ;;  %1122 = vmatpush1.bf16.msra.mxu0 %v1121_v7  ;;  %1156 = vmatpush1.bf16.msra.mxu1 %v1121_v7  ;;  %v424_v61 = vld [vmem:[%s1820_s3 + $0x38] sm:$0xff]  ;;  %v427_v7 = vld [vmem:[%s1820_s3 + $0x50] sm:$0xff]  ;;  %v430_v9 = vld [vmem:[%s1820_s3 + $0x68] sm:$0xff] }
  0xf8   :  { %v1184_v14 = vpop.eup %1183  ;;  %v359_v15 = vadd.f32 %v358_v13, %v134_v63  ;;  %1123 = vmatprep.subr.bf16.mxu0 %v1274_v17  ;;  %1147 = vmatprep.subr.bf16.mxu1 %v1274_v17  ;;  %v423_v63 = vld [vmem:[%s1820_s3 + $0x30] sm:$0xff]  ;;  %v432_v13 = vld [vmem:[%s1820_s3 + $0x78] sm:$0xff] }
  0xf9   :  { %1193 = vtanh.f32 %v364_v12  ;;  %v1124_v16 = vpack.c.bf16 %v1182_v10, %v1184_v14  ;;  %v448_v10 = vld [vmem:[%s1820_s3 + $0xf8] sm:$0xff]  ;;  %v447_v12 = vld [vmem:[%s1820_s3 + $0xf0] sm:$0xff]  ;;  %v450_v14 = vld [vmem:[%s1820_s3 + $0x108] sm:$0xff] }
  0xfa   :  { %1195 = vtanh.f32 %v359_v15  ;;  %v1103_v18 = vpop.f32.mrb[14].mxu0  ;;  %v431_v15 = vld [vmem:[%s1820_s3 + $0x70] sm:$0xff] }
  0xfb   :  { %v1186_v19 = vpop.eup %1185  ;;  %v374_v20 = vadd.f32 %v1103_v18, %v149_v8  ;;  %v368_v21 = vpop.f32.mrb[15].mxu0  ;;  %1125 = vmatpush1.bf16.msra.mxu0 %v1124_v16  ;;  %1157 = vmatpush1.bf16.msra.mxu1 %v1124_v16  ;;  %v445_v8 = vld [vmem:[%s1820_s3 + $0xe0] sm:$0xff]  ;;  %v434_v18 = vld [vmem:[%s1820_s3 + $0x88] sm:$0xff] }
  0xfc   :  { %v1188_v22 = vpop.eup %1187  ;;  %v369_v24 = vadd.f32 %v368_v21, %v144_v11  ;;  %1126 = vmatprep.subr.bf16.mxu0 %v1274_v17  ;;  %1148 = vmatprep.subr.bf16.mxu1 %v1274_v17  ;;  %v429_v11 = vld [vmem:[%s1820_s3 + $0x60] sm:$0xff]  ;;  %v451_v21 = vld [vmem:[%s1820_s3 + $0x110] sm:$0xff] }
  0xfd   :  { %1197 = vtanh.f32 %v374_v20  ;;  %v1127_v26 = vpack.c.bf16 %v1186_v19, %v1188_v22  ;;  %v449_v16 = vld [vmem:[%s1820_s3 + $0x100] sm:$0xff]  ;;  %v452_v19 = vld [vmem:[%s1820_s3 + $0x118] sm:$0xff]  ;;  %v454_v22 = vld [vmem:[%s1820_s3 + $0x128] sm:$0xff] }
  0xfe   :  { %1199 = vtanh.f32 %v369_v24  ;;  %v1106_v27 = vpop.f32.mrb[16].mxu0  ;;  %v433_v20 = vld [vmem:[%s1820_s3 + $0x80] sm:$0xff]  ;;  %v456_v24 = vld [vmem:[%s1820_s3 + $0x138] sm:$0xff] }
  0xff   :  { %v1190_v28 = vpop.eup %1189  ;;  %v384_v29 = vadd.f32 %v1106_v27, %v159_v23  ;;  %v378_v30 = vpop.f32.mrb[17].mxu0  ;;  %1128 = vmatpush1.bf16.msra.mxu0 %v1127_v26  ;;  %1158 = vmatpush1.bf16.msra.mxu1 %v1127_v26  ;;  %v453_v23 = vld [vmem:[%s1820_s3 + $0x120] sm:$0xff] }
 0x100   :  { %v1192_v31 = vpop.eup %1191  ;;  %v379_v32 = vadd.f32 %v378_v30, %v154_v25  ;;  %1129 = vmatprep.subr.bf16.mxu0 %v1274_v17  ;;  %1149 = vmatprep.subr.bf16.mxu1 %v1274_v17  ;;  %v455_v25 = vld [vmem:[%s1820_s3 + $0x130] sm:$0xff]  ;;  %v480_v26 = vpop.permute.xlu0 %479 }
 0x101   :  { %1201 = vtanh.f32 %v384_v29  ;;  %v1130_v33 = vpack.c.bf16 %v1190_v28, %v1192_v31  ;;  %v485_v27 = vpop.permute.xlu1 %484 }
 0x102   :  { %1203 = vtanh.f32 %v379_v32  ;;  %v1109_v35 = vpop.f32.mrb[18].mxu0 }
 0x103   :  { %v1194_v36 = vpop.eup %1193  ;;  %v394_v38 = vadd.f32 %v1109_v35, %v169_v34  ;;  %v388_v39 = vpop.f32.mrb[19].mxu0  ;;  %1131 = vmatpush1.bf16.msra.mxu0 %v1130_v33  ;;  %1159 = vmatpush1.bf16.msra.mxu1 %v1130_v33 }
 0x104   :  { %v1196_v40 = vpop.eup %1195  ;;  %v389_v41 = vadd.f32 %v388_v39, %v164_v37  ;;  %1132 = vmatprep.subr.bf16.mxu0 %v1274_v17  ;;  %1150 = vmatprep.subr.bf16.mxu1 %v1274_v17  ;;  %v490_v28 = vpop.permute.xlu0 %489 }
 0x105   :  { %1205 = vtanh.f32 %v394_v38  ;;  %v1133_v42 = vpack.c.bf16 %v1194_v36, %v1196_v40  ;;  %v495_v29 = vpop.permute.xlu1 %494 }
 0x106   :  { %1207 = vtanh.f32 %v389_v41 }
 0x107   :  { %v1198_v43 = vpop.eup %1197  ;;  %1134 = vmatpush1.bf16.msra.mxu0 %v1133_v42  ;;  %1160 = vmatpush1.bf16.msra.mxu1 %v1133_v42 }
 0x108   :  { %v1200_v44 = vpop.eup %1199  ;;  %1135 = vmatprep.subr.bf16.mxu0 %v1274_v17  ;;  %1151 = vmatprep.subr.bf16.mxu1 %v1274_v17  ;;  %v500_v30 = vpop.permute.xlu0 %499 }
 0x109   :  { %v1136_v45 = vpack.c.bf16 %v1198_v43, %v1200_v44  ;;  %v505_v31 = vpop.permute.xlu1 %504 }
 0x10b   :  { %v1202_v46 = vpop.eup %1201  ;;  %1137 = vmatpush1.bf16.msra.mxu0 %v1136_v45  ;;  %1161 = vmatpush1.bf16.msra.mxu1 %v1136_v45 }
 0x10c   :  { %v1204_v47 = vpop.eup %1203  ;;  %1138 = vmatprep.subr.bf16.mxu0 %v1274_v17  ;;  %1152 = vmatprep.subr.bf16.mxu1 %v1274_v17  ;;  %v1745_v32 = vpop.permute.xlu0 %509 }
 0x10d   :  { %v1139_v48 = vpack.c.bf16 %v1202_v46, %v1204_v47  ;;  %v1747_v33 = vpop.permute.xlu1 %514 }
 0x10f   :  { %v1206_v49 = vpop.eup %1205  ;;  %1140 = vmatpush1.bf16.msra.mxu0 %v1139_v48  ;;  %1162 = vmatpush1.bf16.msra.mxu1 %v1139_v48 }
 0x110   :  { %v1208_v50 = vpop.eup %1207  ;;  %1141 = vmatprep.subr.bf16.mxu0 %v1274_v17  ;;  %1153 = vmatprep.subr.bf16.mxu1 %v1274_v17  ;;  %v419_v17 = vld [vmem:[%s1820_s3 + $0x10] sm:$0xff]  ;;  %v1749_v34 = vpop.permute.xlu0 %519  ;;  %s1275_s3 = smov [#allocation3]  }
 0x111   :  { %v1142_v51 = vpack.c.bf16 %v1206_v49, %v1208_v50  ;;  %v1751_v35 = vpop.permute.xlu1 %524  ;;  %s1006_s27 = sshll.u32 %s1275_s3, 4  ;;  %s1007_s27 = int_to_ptr.vmem [resolvable:$true] %s1006_s27 }
 0x112   :  { %s1249_s4 = scalar_lea.vmem %s1007_s27, 16  ;;  %s1253_s28 = scalar_lea.vmem %s1007_s27, 32 }
 0x113   :  { %1143 = vmatpush1.bf16.msra.mxu0 %v1142_v51  ;;  %1163 = vmatpush1.bf16.msra.mxu1 %v1142_v51  ;;  %p1250_p0 = scmp.ne.s32.totalorder %s1007_s27, %s1249_s4  ;;  %p1254_p1 = scmp.lt.s32.totalorder %s1007_s27, %s1007_s27 }
 0x114   :  { %v1753_v36 = vpop.permute.xlu0 %529  ;;  %p1255_p2 = scmp.lt.s32.totalorder %s1253_s28, %s1249_s4 }
 0x115   :  { %v846_v37 = vpop.permute.xlu1 %845 }
 0x116   :  { %703 = vmatmul.mubr.f32.vlgmr.msra.gmra.mrb[20].mxu0 %v417_v52  ;;  %748 = vmatmul.mubr.f32.vlgmr.msra.gmra.mrb[0].mxu1 %v435_v53  ;;  %p1256_p3 = por %p1255_p2, %p1254_p1 }
 0x117   :  { %1035 = vmatprep.mubr.msk.f32.mxu0 %vm577_vm1, %v420_v54  ;;  %1044 = vmatprep.mubr.msk.f32.mxu1 %vm577_vm1, %v438_v55 }
 0x118   :  { %v851_v38 = vpop.permute.xlu0 %850  ;;  %p1257_p4 = pnand %p1256_p3, %p1250_p0 }
 0x119   :  { %v856_v39 = vpop.permute.xlu1 %855 }
 0x11a   :  { %708 = vmatmul.mubr.f32.gmra.mrb[22].mxu0 %v419_v17  ;;  %753 = vmatmul.mubr.f32.gmra.mrb[2].mxu1 %v437_v56 }
 0x11b   :  { %1036 = vmatprep.mubr.msk.f32.mxu0 %vm577_vm1, %v422_v57  ;;  %1045 = vmatprep.mubr.msk.f32.mxu1 %vm577_vm1, %v440_v58 }
 0x11c   :  { %v861_v40 = vpop.permute.xlu0 %860 }
 0x11d   :  { %v1755_v41 = vpop.permute.xlu1 %865 }
 0x11e   :  { %713 = vmatmul.mubr.f32.gmra.mrb[24].mxu0 %v421_v59  ;;  %758 = vmatmul.mubr.f32.gmra.mrb[4].mxu1 %v439_v60 }
 0x11f   :  { %1037 = vmatprep.mubr.msk.f32.mxu0 %vm577_vm1, %v424_v61  ;;  %1046 = vmatprep.mubr.msk.f32.mxu1 %vm577_vm1, %v442_v62 }
 0x120   :  { %v1757_v42 = vpop.permute.xlu0 %534 }
 0x121   :  { %v1759_v43 = vpop.permute.xlu1 %870 }
 0x122   :  { %718 = vmatmul.mubr.f32.gmra.mrb[26].mxu0 %v423_v63  ;;  %763 = vmatmul.mubr.f32.gmra.mrb[6].mxu1 %v441_v0 }
 0x123   :  { %1038 = vmatprep.mubr.msk.f32.mxu0 %vm577_vm1, %v426_v1  ;;  %1047 = vmatprep.mubr.msk.f32.mxu1 %vm577_vm1, %v444_v2 }
 0x124   :  { %v1761_v44 = vpop.permute.xlu0 %539 }
 0x125   :  { %v1763_v45 = vpop.permute.xlu1 %875 }
 0x126   :  { %723 = vmatmul.mubr.f32.gmra.mrb[28].mxu0 %v425_v3  ;;  %768 = vmatmul.mubr.f32.gmra.mrb[8].mxu1 %v443_v4 }
 0x127   :  { %1039 = vmatprep.mubr.msk.f32.mxu0 %vm577_vm1, %v428_v5  ;;  %1048 = vmatprep.mubr.msk.f32.mxu1 %vm577_vm1, %v446_v6 }
 0x128   :  { %v1767_v51 = vpop.permute.xlu0 %544 }
 0x129   :  { %v1771_v56 = vpop.permute.xlu1 %880 }
 0x12a   :  { %728 = vmatmul.mubr.f32.gmra.mrb[30].mxu0 %v427_v7  ;;  %773 = vmatmul.mubr.f32.gmra.mrb[10].mxu1 %v445_v8 }
 0x12b   :  { %1040 = vmatprep.mubr.msk.f32.mxu0 %vm577_vm1, %v430_v9  ;;  %1049 = vmatprep.mubr.msk.f32.mxu1 %vm577_vm1, %v448_v10 }
 0x12c   :  { %v1775_v62 = vpop.permute.xlu0 %549 }
 0x12d   :  { %v1779_v5 = vpop.permute.xlu1 %885 }
 0x12e   :  { %733 = vmatmul.mubr.f32.gmra.mrb[32].mxu0 %v429_v11  ;;  %778 = vmatmul.mubr.f32.gmra.mrb[12].mxu1 %v447_v12 }
 0x12f   :  { %1041 = vmatprep.mubr.msk.f32.mxu0 %vm577_vm1, %v432_v13  ;;  %1050 = vmatprep.mubr.msk.f32.mxu1 %vm577_vm1, %v450_v14 }
 0x130   :  { %v1781_v14 = vpop.permute.xlu0 %554 }
 0x132   :  { %738 = vmatmul.mubr.f32.gmra.mrb[34].mxu0 %v431_v15  ;;  %783 = vmatmul.mubr.f32.gmra.mrb[14].mxu1 %v449_v16 }
 0x133   :  { %1042 = vmatprep.mubr.msk.f32.mxu0 %vm577_vm1, %v434_v18  ;;  %1051 = vmatprep.mubr.msk.f32.mxu1 %vm577_vm1, %v452_v19 }
 0x136   :  { %743 = vmatmul.mubr.f32.gmra.mrb[36].mxu0 %v433_v20  ;;  %788 = vmatmul.mubr.f32.gmra.mrb[16].mxu1 %v451_v21 }
 0x137   :  { %1052 = vmatprep.mubr.msk.f32.mxu1 %vm577_vm1, %v454_v22 }
 0x13a   :  { %793 = vmatmul.mubr.f32.gmra.mrb[18].mxu1 %v453_v23 }
 0x13b   :  { %1053 = vmatprep.mubr.msk.f32.mxu1 %vm577_vm1, %v456_v24  ;;  %v1783_v24 = vpop.permute.xlu1 %890 }
 0x13e   :  { %798 = vmatmul.mubr.f32.gmra.mrb[20].mxu1 %v455_v25 }
 0x1e9   :  { %v704_v46 = vpop.f32.mrb[20].mxu0  ;;  %v1765_v47 = vpop.f32.mrb[0].mxu1 }
 0x1ea   :  { %v705_v48 = vadd.f32 %v704_v46, %v480_v26  ;;  %v706_v49 = vpop.f32.mrb[21].mxu0  ;;  %v751_v50 = vpop.f32.mrb[1].mxu1 }
 0x1eb   :  { %v560_v46 = vpop.permute.xlu0 %559 }
 0x1ec   :  { %1209 = vtanh.f32 %v705_v48 }
 0x1ed   :  { %v709_v52 = vpop.f32.mrb[22].mxu0  ;;  %v1769_v53 = vpop.f32.mrb[2].mxu1 }
 0x1ee   :  { %v710_v54 = vadd.f32 %v709_v52, %v485_v27  ;;  %v711_v55 = vpop.f32.mrb[23].mxu0  ;;  %v756_v17 = vpop.f32.mrb[3].mxu1 }
 0x1ef   :  { %v750_v55 = vadd.f32 %v1765_v47, %v1751_v35 }
 0x1f0   :  { %1211 = vtanh.f32 %v710_v54 }
 0x1f1   :  { %v714_v57 = vpop.f32.mrb[24].mxu0  ;;  %v1773_v58 = vpop.f32.mrb[4].mxu1 }
 0x1f2   :  { %v715_v59 = vadd.f32 %v714_v57, %v490_v28  ;;  %v716_v60 = vpop.f32.mrb[25].mxu0  ;;  %v761_v61 = vpop.f32.mrb[5].mxu1  ;;  %v760_v35 = vadd.f32 %v1773_v58, %v1757_v42 }
 0x1f3   :  { %v896_v57 = vpop.permute.xlu1 %895  ;;  %v755_v61 = vadd.f32 %v1769_v53, %v1753_v36 }
 0x1f4   :  { %1213 = vtanh.f32 %v715_v59 }
 0x1f5   :  { %v719_v63 = vpop.f32.mrb[26].mxu0  ;;  %v1777_v0 = vpop.f32.mrb[6].mxu1 }
 0x1f6   :  { %v720_v1 = vadd.f32 %v719_v63, %v495_v29  ;;  %v721_v2 = vpop.f32.mrb[27].mxu0  ;;  %v766_v3 = vpop.f32.mrb[7].mxu1  ;;  %v765_v36 = vadd.f32 %v1777_v0, %v1761_v44 }
 0x1f7   :  { %v1210_v4 = vpop.eup %1209  ;;  %v565_v3 = vpop.permute.xlu0 %564 }
 0x1f8   :  { %1215 = vtanh.f32 %v720_v1  ;;  %v943_v12 = vmul.f32 %v1210_v4, %v846_v37 }
 0x1f9   :  { %v724_v6 = vpop.f32.mrb[28].mxu0  ;;  %v769_v7 = vpop.f32.mrb[8].mxu1 }
 0x1fa   :  { %v1212_v8 = vpop.eup %1211  ;;  %v725_v9 = vadd.f32 %v724_v6, %v500_v30  ;;  %v726_v10 = vpop.f32.mrb[29].mxu0 }
 0x1fb   :  { %v771_v11 = vpop.f32.mrb[9].mxu1  ;;  %v944_v13 = vmul.f32 %v1212_v8, %v851_v38  ;;  %v901_v6 = vpop.permute.xlu1 %900  ;;  %v770_v8 = vadd.f32 %v769_v7, %v1767_v51 }
 0x1fc   :  { %1217 = vtanh.f32 %v725_v9  ;;  %v570_v11 = vpop.permute.xlu0 %569 }
 0x1fd   :  { %v963_v15 = vadd.f32 %v944_v13, %v943_v12  ;;  %v729_v16 = vpop.f32.mrb[30].mxu0  ;;  %v774_v18 = vpop.f32.mrb[10].mxu1 }
 0x1fe   :  { %v1214_v19 = vpop.eup %1213  ;;  %v730_v20 = vadd.f32 %v729_v16, %v505_v31  ;;  %v731_v21 = vpop.f32.mrb[31].mxu0  ;;  %v775_v42 = vadd.f32 %v774_v18, %v1775_v62 }
 0x1ff   :  { %v776_v22 = vpop.f32.mrb[11].mxu1  ;;  %v945_v23 = vmul.f32 %v1214_v19, %v856_v39  ;;  %v906_v13 = vpop.permute.xlu1 %905 }
 0x200   :  { %1219 = vtanh.f32 %v730_v20  ;;  %v575_v19 = vpop.permute.xlu0 %574 }
 0x201   :  { %v964_v25 = vadd.f32 %v963_v15, %v945_v23  ;;  %v734_v26 = vpop.f32.mrb[32].mxu0  ;;  %v779_v27 = vpop.f32.mrb[12].mxu1 }
 0x202   :  { %v1216_v28 = vpop.eup %1215  ;;  %v735_v29 = vadd.f32 %v734_v26, %v1745_v32  ;;  %v736_v30 = vpop.f32.mrb[33].mxu0  ;;  %v780_v44 = vadd.f32 %v779_v27, %v1781_v14 }
 0x203   :  { %v781_v37 = vpop.f32.mrb[13].mxu1  ;;  %v946_v38 = vmul.f32 %v1216_v28, %v861_v40 }
 0x204   :  { %1221 = vtanh.f32 %v735_v29 }
 0x205   :  { %v965_v48 = vadd.f32 %v964_v25, %v946_v38  ;;  %v739_v49 = vpop.f32.mrb[34].mxu0  ;;  %v784_v31 = vpop.f32.mrb[14].mxu1 }
 0x206   :  { %v1218_v50 = vpop.eup %1217  ;;  %v740_v39 = vadd.f32 %v739_v49, %v1747_v33  ;;  %v741_v52 = vpop.f32.mrb[35].mxu0  ;;  %v785_v16 = vadd.f32 %v784_v31, %v560_v46 }
 0x207   :  { %v786_v54 = vpop.f32.mrb[15].mxu1  ;;  %v947_v17 = vmul.f32 %v1218_v50, %v1755_v41 }
 0x208   :  { %1223 = vtanh.f32 %v740_v39 }
 0x209   :  { %v966_v32 = vadd.f32 %v965_v48, %v947_v17  ;;  %v744_v59 = vpop.f32.mrb[36].mxu0  ;;  %v789_v40 = vpop.f32.mrb[16].mxu1  ;;  %1225 = vtanh.f32 %v750_v55 }
 0x20a   :  { %v1220_v60 = vpop.eup %1219  ;;  %v745_v63 = vadd.f32 %v744_v59, %v1749_v34  ;;  %v746_v1 = vpop.f32.mrb[37].mxu0  ;;  %v790_v20 = vadd.f32 %v789_v40, %v565_v3 }
 0x20b   :  { %v791_v33 = vpop.f32.mrb[17].mxu1  ;;  %v948_v2 = vmul.f32 %v1220_v60, %v1759_v43 }
 0x20c   :  { %1227 = vtanh.f32 %v745_v63 }
 0x20d   :  { %v967_v41 = vadd.f32 %v966_v32, %v948_v2  ;;  %v794_v47 = vpop.f32.mrb[18].mxu1  ;;  %1229 = vtanh.f32 %v755_v61 }
 0x20e   :  { %v1222_v4 = vpop.eup %1221  ;;  %v796_v53 = vpop.f32.mrb[19].mxu1  ;;  %1231 = vtanh.f32 %v760_v35  ;;  %v795_v22 = vadd.f32 %v794_v47, %v570_v11  ;;  %v994_v47 = vlaneseq }
 0x20f   :  { %v949_v34 = vmul.f32 %v1222_v4, %v1763_v45  ;;  %1233 = vtanh.f32 %v765_v36 }
 0x210   :  { %1235 = vtanh.f32 %v770_v8  ;;  %v995_v36 = vshrl.u32 %v994_v47, 7 }
 0x211   :  { %v968_v43 = vadd.f32 %v967_v41, %v949_v34  ;;  %v799_v9 = vpop.f32.mrb[20].mxu1  ;;  %1237 = vtanh.f32 %v775_v42 }
 0x212   :  { %v1224_v10 = vpop.eup %1223  ;;  %v801_v58 = vpop.f32.mrb[21].mxu1  ;;  %1239 = vtanh.f32 %v780_v44  ;;  %v800_v26 = vadd.f32 %v799_v9, %v575_v19  ;;  %v996_v8 = vsub.s32 0, %v995_v36 }
 0x213   :  { %v950_v12 = vmul.f32 %v1224_v10, %v1771_v56  ;;  %v1226_v0 = vpop.eup %1225  ;;  %v911_v56 = vpop.permute.xlu1 %910  ;;  %1241 = vtanh.f32 %v785_v16 }
 0x214   :  { %v952_v62 = vmul.f32 %v1226_v0, %v1783_v24  ;;  %1243 = vtanh.f32 %v790_v20 }
 0x215   :  { %v969_v15 = vadd.f32 %v968_v43, %v950_v12  ;;  %1245 = vtanh.f32 %v795_v22 }
 0x216   :  { %v1228_v45 = vpop.eup %1227  ;;  %1247 = vtanh.f32 %v800_v26 }
 0x217   :  { %v951_v51 = vmul.f32 %v1228_v45, %v1779_v5  ;;  %v1230_v7 = vpop.eup %1229  ;;  %v916_v5 = vpop.permute.xlu0 %915 }
 0x218   :  { %v1232_v21 = vpop.eup %1231  ;;  %v953_v23 = vmul.f32 %v1230_v7, %v896_v57  ;;  %v921_v46 = vpop.permute.xlu1 %920 }
 0x219   :  { %v970_v18 = vadd.f32 %v969_v15, %v951_v51  ;;  %v1234_v25 = vpop.eup %1233  ;;  %v954_v27 = vmul.f32 %v1232_v21, %v901_v6 }
 0x21a   :  { %v1236_v29 = vpop.eup %1235  ;;  %v955_v30 = vmul.f32 %v1234_v25, %v906_v13 }
 0x21b   :  { %v971_v14 = vadd.f32 %v970_v18, %v952_v62  ;;  %v1238_v38 = vpop.eup %1237  ;;  %v956_v24 = vmul.f32 %v1236_v29, %v911_v56  ;;  %v926_v52 = vpop.permute.xlu0 %925 }
 0x21c   :  { %v1240_v49 = vpop.eup %1239  ;;  %v957_v31 = vmul.f32 %v1238_v38, %v916_v5  ;;  %v931_v57 = vpop.permute.xlu1 %930 }
 0x21d   :  { %v972_v28 = vadd.f32 %v971_v14, %v953_v23  ;;  %v1242_v39 = vpop.eup %1241  ;;  %v958_v54 = vmul.f32 %v1240_v49, %v921_v46 }
 0x21e   :  { %v1244_v17 = vpop.eup %1243  ;;  %v959_v32 = vmul.f32 %v1242_v39, %v926_v52 }
 0x21f   :  { %v973_v37 = vadd.f32 %v972_v28, %v954_v27  ;;  %v1246_v40 = vpop.eup %1245  ;;  %v960_v60 = vmul.f32 %v1244_v17, %v931_v57  ;;  %v936_v1 = vpop.permute.xlu0 %935 }
 0x220   :  { %v1248_v63 = vpop.eup %1247  ;;  %v961_v2 = vmul.f32 %v1246_v40, %v936_v1  ;;  %v941_v3 = vpop.permute.xlu1 %940 }
 0x221   :  { %v974_v48 = vadd.f32 %v973_v37, %v955_v30  ;;  %v962_v35 = vmul.f32 %v1248_v63, %v941_v3 }
 0x223   :  { %v975_v50 = vadd.f32 %v974_v48, %v956_v24  ;;  %v992_v9 = vpop.permute.xlu0 %991 }
 0x224   :  { %v997_v11 = vrot.slane %v992_v9, %v996_v8 }
 0x225   :  { %v976_v55 = vadd.f32 %v975_v50, %v957_v31 }
 0x227   :  { %v977_v59 = vadd.f32 %v976_v55, %v958_v54 }
 0x229   :  { %v978_v61 = vadd.f32 %v977_v59, %v959_v32 }
 0x22b   :  { %v979_v33 = vadd.f32 %v978_v61, %v960_v60 }
 0x22d   :  { %v980_v41 = vadd.f32 %v979_v33, %v961_v2 }
 0x22f   :  { %v981_v4 = vadd.f32 %v980_v41, %v962_v35 }
 0x231   :  { %v982_v6 = vrot.slane %v981_v4, 4 }
 0x233   :  { %v983_v53 = vadd.f32 %v982_v6, %v981_v4 }
 0x235   :  { %v984_v34 = vrot.slane %v983_v53, 2 }
 0x237   :  { %v985_v43 = vadd.f32 %v984_v34, %v983_v53 }
 0x239   :  { %v986_v10 = vrot.slane %v985_v43, 1 }
 0x23b   :  { %v987_v42 = vadd.f32 %v986_v10, %v985_v43 }
 0x23d   :  { %v998_v58 = vadd.f32 %v997_v11, %v987_v42 }
 0x23f   :  { %999 = vst [vmem:[#allocation3] sm:$0x1] %v998_v58 }
 0x240   :  { %1260 = shalt.err (!%p1257_p4)
}
 0x241   :  { %s1261_s8 = scalar_lea.hbm %s1824_s7, 16 }
 0x242   :  { %p1262_p5 = scmp.ne.s32.totalorder %s1824_s7, %s1261_s8  ;;  %p1265_p6 = scmp.lt.u32.totalorder %s1261_s8, %s1824_s7 }
 0x244   :  { %p1267_p7 = pnand %p1265_p6, %p1262_p5 }
 0x246   :  { %1270 = shalt.err (!%p1267_p7)
}
 0x247   :  { %1009 = dma.vmem_to_hbm [thread:$0]  %s1007_s27, 16, %s1824_s7, [#allocation4]  }
 0x248   :  { %1271 = dma.done.wait [#allocation4], 16  }
 0x249   :  { %1272 = vsyncadd [#allocation4], 4294967280 }
 0x24a   :  { %1013 = vsyncpa [#allocation4], 1 }

</bundles_post_ra>
